<compile_context>
chip_gen: v5e
topology: v5e:2x2
jax: 0.10.0
libtpu: 0.0.40
codegen_flags: <defaults>
</compile_context>

<pallas_src>
import math

import jax
import jax.numpy as jnp
from jax.experimental import pallas as pl
from jax.experimental.pallas import tpu as pltpu

_LANE = 128
_SUBLANE = 8


# ----------------------------- kernels --------------------------------------


def _embedding_mlp_kernel(x_ref, w1_ref, b1_ref, w2_ref, b2_ref, out_ref):
    """pass_linear=True: relu(x @ w1_full + b1) @ w2_mix + b_fused."""
    # Cast to the MXU operand dtype in VMEM (x is read from HBM exactly once).
    x = x_ref[...].astype(w1_ref.dtype)
    h = jnp.dot(x, w1_ref[...], preferred_element_type=jnp.float32) + b1_ref[...]
    h = jnp.maximum(h, 0.0)                       # ReLU in f32 on the VPU
    # TODO(synk): nn.Dropout treated as identity (inference/eval semantics).
    h = h.astype(w2_ref.dtype)
    out_ref[...] = (jnp.dot(h, w2_ref[...], preferred_element_type=jnp.float32)
                    + b2_ref[...])
    # TODO(synk): MLP-path output stays lane-sparse (width F); a lane-dense
    # repack here would need an in-kernel cross-lane reshape of the result.


def _embedding_matmul_kernel(x_ref, w_ref, b_ref, out_ref):
    """pass_linear=False: gather + time-weighted sum folded into one matmul."""
    x = x_ref[...].astype(w_ref.dtype)
    out_ref[...] = (jnp.dot(x, w_ref[...], preferred_element_type=jnp.float32)
                    + b_ref[...])


# --------------------------- parameter fusion --------------------------------


def fuse_params(params, sample_index, *, time_step, feature_size, n_input):
    """One-time algebraic folding of gather + mix + biases into the weights.

    All folds use elementwise multiply + scatter-add (exact in f32).
    """
    T, F, N = time_step, feature_size, n_input
    sidx = jnp.asarray(sample_index, dtype=jnp.int32)
    w1, b1, w2, b2 = params["w1"], params["b1"], params["w2"], params["b2"]
    weight, bias = params["weight"], params["bias"]
    TH = w1.shape[1]

    # Fold the x[:, :, sample_index] column gather into w1:
    #   x.reshape(B, T*N) @ w1_full == x[:, :, sidx].reshape(B, T*F) @ w1
    rows = (jnp.arange(T)[:, None] * N + sidx[None, :]).reshape(-1)          # (T*F,)
    w1_full = jnp.zeros((T * N, TH), w1.dtype).at[rows].add(w1)

    # Fold the time-weighted sum + bias into the second Linear:
    #   emb[b, f] = sum_t y[b, t*F+f] * weight[t, f] + bias[f]
    w2_mix = (w2.reshape(TH, T, F) * weight[None, :, :]).sum(axis=1)         # (TH, F)
    b_fused = (b2.reshape(T, F) * weight).sum(axis=0) + bias                 # (F,)

    # pass_linear=False path: gather + weighted sum as a single (T*N, F) weight.
    rmat = jnp.arange(T)[:, None] * N + sidx[None, :]                        # (T, F)
    cols = jnp.broadcast_to(jnp.arange(F)[None, :], (T, F))
    w_mix_full = jnp.zeros((T * N, F), weight.dtype).at[rmat, cols].add(weight)

    # Lane-dense variant: block-diagonal expansion so G batch rows map to one
    # 128-lane output row:  x.reshape(B/G, G*T*N) @ w_mix_super -> (B/G, 128).
    if F <= _LANE and _LANE % F == 0:
        G = _LANE // F
        w_mix_super = jnp.kron(jnp.eye(G, dtype=w_mix_full.dtype), w_mix_full)
        bias_super = jnp.tile(bias, G)                                        # (128,)
    else:
        G, w_mix_super, bias_super = None, None, None

    return dict(w1_full=w1_full, b1=b1, w2_mix=w2_mix, b_fused=b_fused,
                w_mix_full=w_mix_full, bias=bias,
                lane_group=G, w_mix_super=w_mix_super, bias_super=bias_super)


# ------------------------------ tiling helpers --------------------------------


def _round_up(n, m):
    return ((n + m - 1) // m) * m


def _pick_tile(rows, block_rows):
    """Batch tile: multiple of 8, capped at block_rows, and >= 2 grid steps
    whenever rows > 8 (so megacore 'parallel' sharding has work to split)."""
    if rows <= _SUBLANE:
        return rows                                   # block == full dim (legal)
    tb = min(_round_up(block_rows, _SUBLANE),
             _round_up(pl.cdiv(rows, 2), _SUBLANE))
    return max(tb, _SUBLANE)


def _vmem_limit_bytes(rows, per_row_bytes):
    """Footprint estimate with margin, clamped so it is legal on every
    generation (v7x has only 64 MiB VMEM per TensorCore)."""
    est = int(rows * per_row_bytes * 1.5) + (4 << 20)
    return int(min(max(est, 32 << 20), 56 << 20))


def _x_spec(shape, buffering=None):
    if buffering is not None and buffering != 2:
        # e.g. pl.Buffered(3) on v5e if the x DMA wait shows up exposed.
        return pl.BlockSpec(shape, lambda i: (i, 0),
                            pipeline_mode=pl.Buffered(buffering))
    return pl.BlockSpec(shape, lambda i: (i, 0))


# ------------------------------ wrapper ---------------------------------------


def embedding_forward(x, fused, *, pass_linear, mxu_dtype=jnp.bfloat16,
                      block_b=8192, x_buffering=None):
    """x: (B, T, N_in), f32 or bf16.  Returns emb: (B, feature_size) float32.

    If the producer already emits bf16 x, pass it through unchanged: the cast
    to the MXU dtype happens in VMEM, so x is read from HBM once at its native
    width.  mxu_dtype=float32 is debug-only (production path is bf16).
    """
    B, T, N_in = x.shape
    K = T * N_in
    F_out = int(fused["bias"].shape[-1])
    x_flat = x.reshape(B, K)                              # row-major reshape (free)

    resident = lambda shape: pl.BlockSpec(shape, lambda i: (0, 0))  # stays in VMEM
    x_bytes = jnp.dtype(x_flat.dtype).itemsize
    w_bytes = jnp.dtype(mxu_dtype).itemsize

    if pass_linear:
        w1 = fused["w1_full"].astype(mxu_dtype)
        b1 = fused["b1"].reshape(1, -1).astype(jnp.float32)
        w2 = fused["w2_mix"].astype(mxu_dtype)
        b2 = fused["b_fused"].reshape(1, -1).astype(jnp.float32)
        TH = w1.shape[1]

        TB = _pick_tile(B, block_b)
        grid = (pl.cdiv(B, TB),)
        # bytes/row resident: x (lane-padded, native + bf16 copy, double-buffered)
        # + h (f32 + bf16) + out (lane-padded f32, double-buffered).
        per_row = 2 * _LANE * x_bytes + _LANE * w_bytes + 6 * TH + 2 * _LANE * 4
        cparams = pltpu.CompilerParams(
            dimension_semantics=("parallel",),
            vmem_limit_bytes=_vmem_limit_bytes(TB, per_row))
        flops = 2 * B * K * TH + 2 * B * TH * F_out
        bytes_accessed = (x_flat.size * x_bytes + w1.size * w_bytes + b1.size * 4
                          + w2.size * w_bytes + b2.size * 4 + B * F_out * 4)
        return pl.pallas_call(
            _embedding_mlp_kernel,
            out_shape=jax.ShapeDtypeStruct((B, F_out), jnp.float32),
            grid=grid,
            in_specs=[_x_spec((TB, K), x_buffering), resident(w1.shape),
                      resident(b1.shape), resident(w2.shape), resident(b2.shape)],
            out_specs=pl.BlockSpec((TB, F_out), lambda i: (i, 0)),
            compiler_params=cparams,
            cost_estimate=pl.CostEstimate(flops=int(flops), transcendentals=0,
                                          bytes_accessed=int(bytes_accessed)),
        )(x_flat, w1, b1, w2, b2)

    # -------------------- pass_linear=False (single fused matmul) --------------
    G = fused.get("lane_group")
    if G is not None and B % G == 0:
        # Lane-dense path: G batch rows per 128-lane output row.
        Bs = B // G
        xs = x_flat.reshape(Bs, G * K)                    # row-major reshape (free)
        w = fused["w_mix_super"].astype(mxu_dtype)        # (G*K, 128) block-diagonal
        b = fused["bias_super"].reshape(1, -1).astype(jnp.float32)
        TBs = _pick_tile(Bs, max(block_b // G, _SUBLANE))
        grid = (pl.cdiv(Bs, TBs),)
        per_row = 2 * G * K * x_bytes + G * K * w_bytes + 2 * _LANE * 4
        cparams = pltpu.CompilerParams(
            dimension_semantics=("parallel",),
            vmem_limit_bytes=_vmem_limit_bytes(TBs, per_row))
        flops = 2 * Bs * (G * K) * _LANE
        bytes_accessed = (xs.size * x_bytes + w.size * w_bytes + b.size * 4
                          + Bs * _LANE * 4)
        out = pl.pallas_call(
            _embedding_matmul_kernel,
            out_shape=jax.ShapeDtypeStruct((Bs, _LANE), jnp.float32),
            grid=grid,
            in_specs=[_x_spec((TBs, G * K), x_buffering),
                      resident(w.shape), resident(b.shape)],
            out_specs=pl.BlockSpec((TBs, _LANE), lambda i: (i, 0)),
            compiler_params=cparams,
            cost_estimate=pl.CostEstimate(flops=int(flops), transcendentals=0,
                                          bytes_accessed=int(bytes_accessed)),
        )(xs, w, b)
        return out.reshape(B, F_out)                      # row-major reshape (free)

    # Fallback (B not a multiple of the lane group): lane-sparse (B, F) output.
    w = fused["w_mix_full"].astype(mxu_dtype)
    b = fused["bias"].reshape(1, -1).astype(jnp.float32)
    TB = _pick_tile(B, block_b)
    grid = (pl.cdiv(B, TB),)
    per_row = 2 * _LANE * x_bytes + _LANE * w_bytes + 2 * _LANE * 4
    cparams = pltpu.CompilerParams(
        dimension_semantics=("parallel",),
        vmem_limit_bytes=_vmem_limit_bytes(TB, per_row))
    flops = 2 * B * K * F_out
    bytes_accessed = (x_flat.size * x_bytes + w.size * w_bytes + b.size * 4
                      + B * F_out * 4)
    return pl.pallas_call(
        _embedding_matmul_kernel,
        out_shape=jax.ShapeDtypeStruct((B, F_out), jnp.float32),
        grid=grid,
        in_specs=[_x_spec((TB, K), x_buffering), resident(w.shape), resident(b.shape)],
        out_specs=pl.BlockSpec((TB, F_out), lambda i: (i, 0)),
        compiler_params=cparams,
        cost_estimate=pl.CostEstimate(flops=int(flops), transcendentals=0,
                                      bytes_accessed=int(bytes_accessed)),
    )(x_flat, w, b)


# ------------------------------ reference -------------------------------------


def reference_forward(x, params, sample_index, *, time_step, feature_size,
                      pass_linear):
    """Pure-JAX f32 mirror of the PyTorch forward (HIGHEST matmul precision)."""
    B = x.shape[0]
    sidx = jnp.asarray(sample_index, dtype=jnp.int32)
    x_sel = jnp.take(x.astype(jnp.float32), sidx, axis=2)              # (B, T, F)
    if pass_linear:
        xf = x_sel.reshape(B, -1)
        h = jnp.maximum(
            jnp.dot(xf, params["w1"], precision=jax.lax.Precision.HIGHEST)
            + params["b1"], 0.0)
        y = (jnp.dot(h, params["w2"], precision=jax.lax.Precision.HIGHEST)
             + params["b2"])
        out = y.reshape(B, time_step, feature_size)
    else:
        out = x_sel
    return jnp.sum(out * params["weight"][None], axis=1) + params["bias"]


def init_params(key, time_step, feature_size, hidden_size):
    """Deterministic init mimicking PyTorch defaults (kaiming_uniform, a=sqrt(5))."""
    TF = time_step * feature_size
    TH = time_step * hidden_size
    ks = jax.random.split(key, 6)

    def kaiming_uniform(k, shape, fan_in, a=math.sqrt(5)):
        gain = math.sqrt(2.0 / (1.0 + a * a))
        bound = gain * math.sqrt(3.0 / fan_in)
        return jax.random.uniform(k, shape, jnp.float32, -bound, bound)

    # Linear weights stored as (in, out); equivalent to PyTorch's y = x @ W.T + b.
    w1 = kaiming_uniform(ks[0], (TF, TH), fan_in=TF)
    b1 = jax.random.uniform(ks[1], (TH,), jnp.float32,
                            -1.0 / math.sqrt(TF), 1.0 / math.sqrt(TF))
    w2 = kaiming_uniform(ks[2], (TH, TF), fan_in=TH)
    b2 = jax.random.uniform(ks[3], (TF,), jnp.float32,
                            -1.0 / math.sqrt(TH), 1.0 / math.sqrt(TH))
    weight = kaiming_uniform(ks[4], (time_step, feature_size), fan_in=feature_size)
    bias = jax.random.uniform(ks[5], (feature_size,), jnp.float32,
                              -1.0 / math.sqrt(feature_size),
                              1.0 / math.sqrt(feature_size))
    return dict(w1=w1, b1=b1, w2=w2, b2=b2, weight=weight, bias=bias)


def _assert_close(got, want, tol, what):
    err = float(jnp.max(jnp.abs(got - want)))
    scale = float(jnp.max(jnp.abs(want))) + 1.0
    assert err <= tol * scale, (what, err, tol * scale)


if __name__ == "__main__":
    # Synthetic config: len(INPUT_LIST)=6, len(INTERACTIVE_LIST)=4 (feature_size),
    # time_step=8, embedding_hidden_size=32.
    T, F_int, N_in, H = 8, 4, 6, 32
    sample_index = [0, 2, 3, 5]   # config.INPUT_LIST.index(j) for j in INTERACTIVE_LIST

    key = jax.random.PRNGKey(0)
    kp, k1, k2, k3 = jax.random.split(key, 4)
    params = init_params(kp, T, F_int, H)
    fused = fuse_params(params, sample_index,
                        time_step=T, feature_size=F_int, n_input=N_in)

    # B=2   : tiny single-step grid (block == full dims).
    # B=4100: multi-step grid with padded tail tile; lane-sparse fallback (4100 % 32 != 0).
    # B=4128: multi-step grid exercising the lane-dense (B/32, 128) output path.
    for B, kx in ((2, k1), (4100, k2), (4128, k3)):
        x = jax.random.normal(kx, (B, T, N_in), dtype=jnp.float32)
        for pass_linear in (True, False):
            ref = reference_forward(x, params, sample_index, time_step=T,
                                    feature_size=F_int, pass_linear=pass_linear)
            emb = jax.block_until_ready(
                embedding_forward(x, fused, pass_linear=pass_linear))
            assert emb.shape == (B, F_int), (B, pass_linear, emb.shape)
            _assert_close(emb, ref, 2e-2, ("bf16", B, pass_linear))

    # Debug-only f32-MXU-operand path (production uses bf16 operands).
    x = jax.random.normal(k1, (2, T, N_in), dtype=jnp.float32)
    for pass_linear in (True, False):
        ref = reference_forward(x, params, sample_index, time_step=T,
                                feature_size=F_int, pass_linear=pass_linear)
        emb = jax.block_until_ready(
            embedding_forward(x, fused, pass_linear=pass_linear,
                              mxu_dtype=jnp.float32))
        _assert_close(emb, ref, 1e-3, ("f32", pass_linear))

    # Optional bf16-x input (halves the dominant x HBM read if the producer can
    # emit bf16); the kernel accepts it unchanged.  Looser tolerance since x
    # itself is rounded.
    xb = jax.random.normal(k2, (4128, T, N_in), dtype=jnp.float32)
    ref = reference_forward(xb, params, sample_index, time_step=T,
                            feature_size=F_int, pass_linear=False)
    emb = jax.block_until_ready(
        embedding_forward(xb.astype(jnp.bfloat16), fused, pass_linear=False))
    _assert_close(emb, ref, 5e-2, "bf16-x")

    print("KERNEL_OK")
</pallas_src>

<mosaic_0001>
module attributes {stable_mosaic.version = 11 : i64} {
  func.func @_embedding_mlp_kernel(%arg0: i32, %arg1: memref<2x48xf32, #tpu.memory_space<vmem>>, %arg2: memref<48x256xbf16, #tpu.memory_space<vmem>>, %arg3: memref<1x256xf32, #tpu.memory_space<vmem>>, %arg4: memref<256x4xbf16, #tpu.memory_space<vmem>>, %arg5: memref<1x4xf32, #tpu.memory_space<vmem>>, %arg6: memref<2x4xf32, #tpu.memory_space<vmem>>) attributes {dimension_semantics = [#tpu.dimension_semantics<parallel>], iteration_bounds = array<i64: 1>, scalar_prefetch = 0 : i64, scratch_operands = 0 : i64, tpu.core_type = #tpu.core_type<tc>, window_params = [{transform_indices = @transform_0, window_bounds = array<i64: 2, 48>}, {pipeline_mode = #tpu.pipeline_mode<synchronous>, transform_indices = @transform_1, window_bounds = array<i64: 48, 256>}, {pipeline_mode = #tpu.pipeline_mode<synchronous>, transform_indices = @transform_2, window_bounds = array<i64: 1, 256>}, {pipeline_mode = #tpu.pipeline_mode<synchronous>, transform_indices = @transform_3, window_bounds = array<i64: 256, 4>}, {pipeline_mode = #tpu.pipeline_mode<synchronous>, transform_indices = @transform_4, window_bounds = array<i64: 1, 4>}, {transform_indices = @transform_5, window_bounds = array<i64: 2, 4>}]} {
    %c0 = arith.constant 0 : index
    %c0_0 = arith.constant 0 : index
    %0 = vector.load %arg1[%c0, %c0_0] : memref<2x48xf32, #tpu.memory_space<vmem>>, vector<2x48xf32>
    %1 = arith.truncf %0 : vector<2x48xf32> to vector<2x48xbf16>
    %c0_1 = arith.constant 0 : index
    %c0_2 = arith.constant 0 : index
    %2 = vector.load %arg2[%c0_1, %c0_2] : memref<48x256xbf16, #tpu.memory_space<vmem>>, vector<48x256xbf16>
    %cst = arith.constant dense<0.000000e+00> : vector<2x256xf32>
    %3 = tpu.matmul %1, %2, %cst {dimension_numbers = #tpu.dot_dimension_numbers<[1], [0], [0], [1], [0, 0, 1, 1], [], []>} : vector<2x48xbf16>, vector<48x256xbf16>, vector<2x256xf32> -> vector<2x256xf32>
    %c0_3 = arith.constant 0 : index
    %c0_4 = arith.constant 0 : index
    %4 = vector.load %arg3[%c0_3, %c0_4] : memref<1x256xf32, #tpu.memory_space<vmem>>, vector<1x256xf32>
    %5 = vector.broadcast %4 : vector<1x256xf32> to vector<2x256xf32>
    %6 = arith.addf %3, %5 : vector<2x256xf32>
    %cst_5 = arith.constant 0.000000e+00 : f32
    %7 = vector.broadcast %cst_5 : f32 to vector<2x256xf32>
    %8 = arith.maximumf %6, %7 : vector<2x256xf32>
    %9 = arith.truncf %8 : vector<2x256xf32> to vector<2x256xbf16>
    %c0_6 = arith.constant 0 : index
    %c0_7 = arith.constant 0 : index
    %10 = vector.load %arg4[%c0_6, %c0_7] : memref<256x4xbf16, #tpu.memory_space<vmem>>, vector<256x4xbf16>
    %cst_8 = arith.constant dense<0.000000e+00> : vector<2x4xf32>
    %11 = tpu.matmul %9, %10, %cst_8 {dimension_numbers = #tpu.dot_dimension_numbers<[1], [0], [0], [1], [0, 0, 1, 1], [], []>} : vector<2x256xbf16>, vector<256x4xbf16>, vector<2x4xf32> -> vector<2x4xf32>
    %c0_9 = arith.constant 0 : index
    %c0_10 = arith.constant 0 : index
    %12 = vector.load %arg5[%c0_9, %c0_10] : memref<1x4xf32, #tpu.memory_space<vmem>>, vector<1x4xf32>
    %13 = vector.broadcast %12 : vector<1x4xf32> to vector<2x4xf32>
    %14 = arith.addf %11, %13 : vector<2x4xf32>
    %c0_11 = arith.constant 0 : index
    %c0_12 = arith.constant 0 : index
    %15 = vector.load %arg6[%c0_11, %c0_12] : memref<2x4xf32, #tpu.memory_space<vmem>>, vector<2x4xf32>
    tpu.vector_store %arg6[%c0_11, %c0_12], %14 {strides = array<i32>} : memref<2x4xf32, #tpu.memory_space<vmem>>, vector<2x4xf32>,
    return
  }
  func.func @transform_0(%arg0: i32) -> (i32, i32) {
    %c0_i32 = arith.constant 0 : i32
    %c0_i32_0 = arith.constant 0 : i32
    return %arg0, %c0_i32 : i32, i32
  }
  func.func @transform_1(%arg0: i32) -> (i32, i32) {
    %c0_i32 = arith.constant 0 : i32
    %c0_i32_0 = arith.constant 0 : i32
    %c0_i32_1 = arith.constant 0 : i32
    return %c0_i32, %c0_i32_0 : i32, i32
  }
  func.func @transform_2(%arg0: i32) -> (i32, i32) {
    %c0_i32 = arith.constant 0 : i32
    %c0_i32_0 = arith.constant 0 : i32
    %c0_i32_1 = arith.constant 0 : i32
    return %c0_i32, %c0_i32_0 : i32, i32
  }
  func.func @transform_3(%arg0: i32) -> (i32, i32) {
    %c0_i32 = arith.constant 0 : i32
    %c0_i32_0 = arith.constant 0 : i32
    %c0_i32_1 = arith.constant 0 : i32
    return %c0_i32, %c0_i32_0 : i32, i32
  }
  func.func @transform_4(%arg0: i32) -> (i32, i32) {
    %c0_i32 = arith.constant 0 : i32
    %c0_i32_0 = arith.constant 0 : i32
    %c0_i32_1 = arith.constant 0 : i32
    return %c0_i32, %c0_i32_0 : i32, i32
  }
  func.func @transform_5(%arg0: i32) -> (i32, i32) {
    %c0_i32 = arith.constant 0 : i32
    %c0_i32_0 = arith.constant 0 : i32
    return %arg0, %c0_i32 : i32, i32
  }
}

</mosaic_0001>

<bundles_post_ra>
// kernel: tpu_custom_call.1
= control target key start
LH: loop header
LB: loop body
LE: loop exit
PB: predicated region body
PF: predicated region fallthrough
CT: control target
= control target key end

     0   :  { %s543_s0 = inlined_call_operand.vmem [shape: f32[2,48], index: 0, kind: input, shape index: {}]   ;;  %s544_s1 = inlined_call_operand.vmem [shape: bf16[48,256], index: 1, kind: input, shape index: {}]   ;;  %s545_s2 = inlined_call_operand.vmem [shape: f32[1,256], index: 2, kind: input, shape index: {}]   ;;  %s546_s3 = inlined_call_operand.vmem [shape: bf16[256,4], index: 3, kind: input, shape index: {}]   ;;  %s547_s4 = inlined_call_operand.vmem [shape: f32[1,4], index: 4, kind: input, shape index: {}]   ;;  %s548_s5 = inlined_call_operand.hbm [shape: f32[2,4], index: 5, kind: output, shape index: {}]  }
   0x1   :  { %v294_v0 = vld [vmem:[%s544_s1 + $0x20] sm:$0xf]  ;;  %v371_v1 = vld [vmem:[%s544_s1 + $0x24] sm:$0xf0]  ;;  %v370_v2 = vld [vmem:[%s544_s1 + $0x24] sm:$0xf] }
   0x2   :  { %v295_v3 = vor.u32 %v371_v1, %v294_v0  ;;  %v296_v4 = vld [vmem:[%s544_s1 + $0x28] sm:$0xf0]  ;;  %v286_v5 = vld [vmem:[%s544_s1 + $0x10] sm:$0xf]  ;;  %v369_v6 = vld [vmem:[%s544_s1 + $0x14] sm:$0xf0] }
   0x3   :  { %v299_v7 = vor.u32 %v370_v2, %v296_v4  ;;  %v368_v8 = vld [vmem:[%s544_s1 + $0x14] sm:$0xf]  ;;  %v288_v9 = vld [vmem:[%s544_s1 + $0x18] sm:$0xf0]  ;;  %v287_v10 = vor.u32 %v369_v6, %v286_v5  ;;  %v278_v11 = vld [vmem:[%s544_s1] sm:$0xf] }
   0x4   :  { %75 = vmatpush.bf16.msra.mxu0 %v295_v3  ;;  %v291_v12 = vor.u32 %v368_v8, %v288_v9  ;;  %v367_v13 = vld [vmem:[%s544_s1 + $0x4] sm:$0xf0]  ;;  %v379_v14 = vld [vmem:[%s546_s3 + $0x38] sm:$0xff]  ;;  %v366_v16 = vld [vmem:[%s544_s1 + $0x4] sm:$0xf] }
   0x5   :  { %88 = vmatpush.bf16.msra.mxu1 %v299_v7  ;;  %v387_v15 = vld [vmem:[%s546_s3 + $0x78] sm:$0xff]  ;;  %v280_v17 = vld [vmem:[%s544_s1 + $0x8] sm:$0xf0]  ;;  %232 = vmatpush.bf16.msra.mxu2 %v379_v14  ;;  %v378_v18 = vld [vmem:[%s546_s3 + $0x30] sm:$0xff]  ;;  %v279_v20 = vor.u32 %v367_v13, %v278_v11 }
   0x6   :  { %245 = vmatpush.bf16.msra.mxu3 %v387_v15  ;;  %v386_v19 = vld [vmem:[%s546_s3 + $0x70] sm:$0xff]  ;;  %v22_v21 = vld [vmem:[%s543_s0] sm:$0x3]  ;;  %v283_v22 = vor.u32 %v366_v16, %v280_v17 }
   0x8   :  { %76 = vmatpush.bf16.msra.mxu0 %v287_v10 }
   0x9   :  { %89 = vmatpush.bf16.msra.mxu1 %v291_v12 }
   0xa   :  { %10 = vsyncpa [#allocation3], 0  ;;  %v23_v23 = vpack.c.bf16 %v22_v21, %v22_v21  ;;  %233 = vmatpush.bf16.msra.mxu2 %v378_v18  ;;  %246 = vmatpush.bf16.msra.mxu3 %v386_v19  ;;  %v377_v24 = vld [vmem:[%s546_s3 + $0x28] sm:$0xff]  ;;  %vm66_vm0 = vcmask 392192   ;;  %v376_v26 = vld [vmem:[%s546_s3 + $0x20] sm:$0xff]  ;;  %s267_s29 = sshll.u32 %s548_s5, 4  ;;  %s268_s29 = int_to_ptr.hbm [resolvable:$true] %s267_s29 }
   0xb   :  { %v385_v25 = vld [vmem:[%s546_s3 + $0x68] sm:$0xff]  ;;  %v384_v27 = vld [vmem:[%s546_s3 + $0x60] sm:$0xff]  ;;  %v375_v28 = vld [vmem:[%s546_s3 + $0x18] sm:$0xff]  ;;  %vm258_vm1 = vcmask 25600  }
   0xc   :  { %77 = vmatpush.bf16.msra.mxu0 %v279_v20  ;;  %v383_v29 = vld [vmem:[%s546_s3 + $0x58] sm:$0xff]  ;;  %v374_v30 = vld [vmem:[%s546_s3 + $0x10] sm:$0xff]  ;;  %v373_v32 = vld [vmem:[%s546_s3 + $0x8] sm:$0xff] }
   0xd   :  { %90 = vmatpush.bf16.msra.mxu1 %v283_v22  ;;  %v382_v31 = vld [vmem:[%s546_s3 + $0x50] sm:$0xff]  ;;  %v381_v33 = vld [vmem:[%s546_s3 + $0x48] sm:$0xff]  ;;  %v372_v34 = vld [vmem:[%s546_s3] sm:$0xff] }
   0xe   :  { %234 = vmatpush.bf16.msra.mxu2 %v377_v24  ;;  %247 = vmatpush.bf16.msra.mxu3 %v385_v25  ;;  %v380_v35 = vld [vmem:[%s546_s3 + $0x40] sm:$0xff] }
   0xf   :  { %300 = vmatmul.msk.bf16.vlgmr.msra.gmra.mxu0 %vm66_vm0, %v23_v23  ;;  %v30_v36 = vld [vmem:[%s545_s2] sm:$0x3]  ;;  %s416_s2 = smov [#allocation2]  }
  0x10   :  { %301 = vmatmul.msk.bf16.vlgmr.msra.gmra.mxu1 %vm66_vm0, %v23_v23  ;;  %v32_v37 = vperm.slane %v30_v36, 0  ;;  %v33_v38 = vperm.slane %v30_v36, 1  ;;  %v389_v49 = vld [vmem:[%s547_s4] ss:$0 sm:$0xff]  ;;  %s265_s1 = sshll.u32 %s416_s2, 4  ;;  %s266_s1 = int_to_ptr.vmem [resolvable:$true] %s265_s1 }
  0x12   :  { %235 = vmatpush.bf16.msra.mxu2 %v376_v26  ;;  %248 = vmatpush.bf16.msra.mxu3 %v384_v27 }
  0x16   :  { %236 = vmatpush.bf16.msra.mxu2 %v375_v28  ;;  %249 = vmatpush.bf16.msra.mxu3 %v383_v29 }
  0x1a   :  { %237 = vmatpush.bf16.msra.mxu2 %v374_v30  ;;  %250 = vmatpush.bf16.msra.mxu3 %v382_v31 }
  0x1e   :  { %238 = vmatpush.bf16.msra.mxu2 %v373_v32  ;;  %251 = vmatpush.bf16.msra.mxu3 %v381_v33 }
  0x22   :  { %239 = vmatpush.bf16.msra.mxu2 %v372_v34  ;;  %252 = vmatpush.bf16.msra.mxu3 %v380_v35 }
  0x8c   :  { %v79_v39 = vpop.f32.mrf.mxu0 }
  0x8d   :  { %v80_v40 = vadd.f32 %v79_v39, %v32_v37  ;;  %v92_v41 = vpop.f32.mrf.mxu1 }
  0x8e   :  { %v93_v42 = vadd.f32 %v92_v41, %v33_v38 }
  0x8f   :  { %v96_v43 = vmax.f32 %v80_v40, 0.0 }
  0x90   :  { %v97_v44 = vmax.f32 %v93_v42, 0.0 }
  0x91   :  { %v98_v45 = vpack.c.bf16 %v96_v43, %v96_v43 }
  0x92   :  { %v99_v46 = vpack.c.bf16 %v97_v44, %v97_v44 }
  0x93   :  { %240 = vmatmul.bf16.vlgmr.msra.gmra.mxu2 %v98_v45 }
  0x94   :  { %253 = vmatmul.bf16.vlgmr.msra.gmra.mxu3 %v99_v46  ;;  %v81_v47 = vpop.f32.mrf.mxu0 }
  0x95   :  { %v94_v48 = vpop.f32.mrf.mxu1 }
 0x116   :  { %v241_v50 = vpop.f32.mrf.mxu2 }
 0x117   :  { %v242_v51 = vadd.f32 %v389_v49, %v241_v50  ;;  %v254_v52 = vpop.f32.mrf.mxu3 }
 0x119   :  { %v255_v53 = vadd.f32 %v254_v52, %v242_v51 }
 0x11b   :  { %259 = vst.msk [vmem:[#allocation2] sm:$0x3] %vm258_vm1, %v255_v53 }
 0x11c   :  { %270 = dma.vmem_to_hbm [thread:$0]  %s266_s1, 32, %s268_s29, [#allocation3]  }
 0x11e   :  { %v243_v54 = vpop.f32.mrf.mxu2 }
 0x11f   :  { %v256_v55 = vpop.f32.mrf.mxu3 }
 0x120   :  { %414 = dma.done.wait [#allocation3], 32  }
 0x121   :  { %415 = vsyncadd [#allocation3], 4294967264 }
 0x122   :  { %275 = vsyncpa [#allocation3], 1 }

</bundles_post_ra>
